<compile_context>
chip_gen: v5e
topology: v5e:2x2
jax: 0.10.0
libtpu: 0.0.40
codegen_flags: <defaults>
</compile_context>

<pallas_src>
import functools

import jax
import jax.numpy as jnp
from jax.experimental import pallas as pl
from jax.experimental.pallas import tpu as pltpu

EPS = 1e-6  # norm_layer = partial(nn.LayerNorm, eps=1e-6)
LANE = 128
VMEM_LIMIT = 64 * 1024 * 1024


def _round_up(x, m):
    return ((x + m - 1) // m) * m


# ----------------------------- kernel helpers ------------------------------

def _layernorm(x, gamma, beta):
    # x: (N, C) f32; gamma, beta: (1, C) f32
    mu = jnp.mean(x, axis=-1, keepdims=True)
    var = jnp.mean(jnp.square(x - mu), axis=-1, keepdims=True)
    return (x - mu) * jax.lax.rsqrt(var + EPS) * gamma + beta


def _mm(a_bf16, b_bf16):
    # bf16 x bf16 on the MXU, f32 accumulation
    return jnp.dot(a_bf16, b_bf16, preferred_element_type=jnp.float32)


def _mm_nt(a_bf16, b_bf16):
    # a @ b.T without materializing the transpose
    return jax.lax.dot_general(
        a_bf16, b_bf16, (((1,), (1,)), ((), ())),
        preferred_element_type=jnp.float32)


# ------------------------------ Pallas kernels -----------------------------

def patch_embed_kernel(xp_ref, w_ref, b_ref, pos_ref, o_ref):
    # xp_ref: (1, Np, PD_PAD) im2col'd (zero-padded) patches of one image
    # w_ref : (PD_PAD, C) bf16 conv weight, b_ref: (1, C) f32, pos_ref: (Np, C) f32
    x = xp_ref[0].astype(jnp.bfloat16)
    y = _mm(x, w_ref[...]) + b_ref[...] + pos_ref[...]
    o_ref[0] = y.astype(o_ref.dtype)


def attn_block_kernel(x_ref, ln1_g, ln1_b, qkv_w, qkv_b, proj_w, proj_b,
                      o_ref, *, num_heads):
    # x = x + attn(norm1(x)); one image per grid step (needs full token seq).
    x = x_ref[0].astype(jnp.float32)                       # (N, C)
    N, C = x.shape
    hd = C // num_heads
    scale = 1.0 / (hd ** 0.5)

    xn = _layernorm(x, ln1_g[...], ln1_b[...]).astype(jnp.bfloat16)
    qkv = _mm(xn, qkv_w[...]) + qkv_b[...]                 # (N, 3C) f32

    # Incremental output projection: one (N, C) accumulator, no lane concat.
    acc = jnp.zeros((N, C), jnp.float32)
    for h in range(num_heads):                             # static unroll
        qh = qkv[:, h * hd:(h + 1) * hd].astype(jnp.bfloat16)
        kh = qkv[:, C + h * hd:C + (h + 1) * hd].astype(jnp.bfloat16)
        vh = qkv[:, 2 * C + h * hd:2 * C + (h + 1) * hd].astype(jnp.bfloat16)
        s = _mm_nt(qh, kh) * scale                         # (N, N) f32
        s = s - jnp.max(s, axis=-1, keepdims=True)
        p = jnp.exp(s)
        p = p * pl.reciprocal(jnp.sum(p, axis=-1, keepdims=True), approx=True)
        ho = _mm(p.astype(jnp.bfloat16), vh)               # (N, hd) f32
        acc = acc + _mm(ho.astype(jnp.bfloat16),
                        proj_w[h * hd:(h + 1) * hd, :])    # (N, C)
    acc = acc + proj_b[...]
    o_ref[0] = (x + acc).astype(o_ref.dtype)


def mlp_block_kernel(x_ref, ln2_g, ln2_b, fc1_w, fc1_b, fc2_w, fc2_b, o_ref):
    # x = x + mlp(norm2(x)); token-tiled (LayerNorm + MLP are per-token).
    x = x_ref[0].astype(jnp.float32)                       # (TN, C)
    xn = _layernorm(x, ln2_g[...], ln2_b[...]).astype(jnp.bfloat16)
    h1 = _mm(xn, fc1_w[...]) + fc1_b[...]                  # (TN, hidden) f32
    h1 = jax.nn.gelu(h1, approximate=False)                # nn.GELU() exact
    h2 = _mm(h1.astype(jnp.bfloat16), fc2_w[...]) + fc2_b[...]
    o_ref[0] = (x + h2).astype(o_ref.dtype)


def head_kernel(x_ref, ln_g, ln_b, hw_ref, hb_ref, o_ref):
    # norm_before_pooling -> mean over tokens -> head linear (lane-padded).
    x = x_ref[0].astype(jnp.float32)                       # (N, C)
    xn = _layernorm(x, ln_g[...], ln_b[...])
    pooled = jnp.mean(xn, axis=0, keepdims=True)           # (1, C)
    logits = _mm(pooled.astype(jnp.bfloat16), hw_ref[...]) + hb_ref[...]
    o_ref[...] = logits.astype(o_ref.dtype)                # (1, NC_PAD)


# ------------------------------ pallas wrappers ----------------------------

def _const_spec(arr):
    nd = arr.ndim
    return pl.BlockSpec(arr.shape, lambda *_: (0,) * nd)


def _choose_token_tile(n):
    for tn in (256, 128, 64, 32, 16, 8):
        if n % tn == 0:
            return tn
    return n


def pallas_patch_embed(xp, w, b, pos):
    B, Np, pd = xp.shape
    C = w.shape[1]
    return pl.pallas_call(
        patch_embed_kernel,
        out_shape=jax.ShapeDtypeStruct((B, Np, C), jnp.float32),
        grid=(B,),
        in_specs=[
            pl.BlockSpec((1, Np, pd), lambda i: (i, 0, 0)),
            _const_spec(w), _const_spec(b), _const_spec(pos),
        ],
        out_specs=pl.BlockSpec((1, Np, C), lambda i: (i, 0, 0)),
        compiler_params=pltpu.CompilerParams(
            dimension_semantics=("parallel",),
            vmem_limit_bytes=VMEM_LIMIT),
    )(xp, w, b, pos)


def pallas_attn(x, bp, num_heads):
    B, N, C = x.shape
    kernel = functools.partial(attn_block_kernel, num_heads=num_heads)
    weights = [bp["ln1_g"], bp["ln1_b"], bp["qkv_w"], bp["qkv_b"],
               bp["proj_w"], bp["proj_b"]]
    return pl.pallas_call(
        kernel,
        out_shape=jax.ShapeDtypeStruct((B, N, C), jnp.float32),
        grid=(B,),
        in_specs=[pl.BlockSpec((1, N, C), lambda i: (i, 0, 0))]
                 + [_const_spec(w) for w in weights],
        out_specs=pl.BlockSpec((1, N, C), lambda i: (i, 0, 0)),
        compiler_params=pltpu.CompilerParams(
            dimension_semantics=("parallel",),
            vmem_limit_bytes=VMEM_LIMIT),
    )(x, *weights)


def pallas_mlp(x, bp):
    B, N, C = x.shape
    tn = _choose_token_tile(N)
    weights = [bp["ln2_g"], bp["ln2_b"], bp["fc1_w"], bp["fc1_b"],
               bp["fc2_w"], bp["fc2_b"]]
    return pl.pallas_call(
        mlp_block_kernel,
        out_shape=jax.ShapeDtypeStruct((B, N, C), jnp.float32),
        grid=(B, N // tn),
        in_specs=[pl.BlockSpec((1, tn, C), lambda i, j: (i, j, 0))]
                 + [_const_spec(w) for w in weights],
        out_specs=pl.BlockSpec((1, tn, C), lambda i, j: (i, j, 0)),
        compiler_params=pltpu.CompilerParams(
            dimension_semantics=("parallel", "parallel"),
            vmem_limit_bytes=VMEM_LIMIT),
    )(x, *weights)


def pallas_head(x, ln_g, ln_b, hw, hb, num_classes):
    B, N, C = x.shape
    nc_pad = hw.shape[1]
    out = pl.pallas_call(
        head_kernel,
        out_shape=jax.ShapeDtypeStruct((B, nc_pad), jnp.float32),
        grid=(B,),
        in_specs=[pl.BlockSpec((1, N, C), lambda i: (i, 0, 0)),
                  _const_spec(ln_g), _const_spec(ln_b),
                  _const_spec(hw), _const_spec(hb)],
        out_specs=pl.BlockSpec((1, nc_pad), lambda i: (i, 0)),
        compiler_params=pltpu.CompilerParams(
            dimension_semantics=("parallel",),
            vmem_limit_bytes=VMEM_LIMIT),
    )(x, ln_g, ln_b, hw, hb)
    return out[:, :num_classes]


# ------------------------------- model glue --------------------------------

def extract_patches(x, ph, pw, pd_pad):
    # x: (B, C, H, W) NCHW -> (B, Hp*Wp, pd_pad), contraction order matching
    # nn.Conv2d weight (embed, C, ph, pw); lane dim zero-padded to pd_pad.
    B, C, H, W = x.shape
    Hp, Wp = H // ph, W // pw
    x = x.reshape(B, C, Hp, ph, Wp, pw)
    x = x.transpose(0, 2, 4, 1, 3, 5)      # (B, Hp, Wp, C, ph, pw)
    x = x.reshape(B, Hp * Wp, C * ph * pw)
    pd = C * ph * pw
    if pd_pad > pd:
        x = jnp.pad(x, ((0, 0), (0, 0), (0, pd_pad - pd)))
    return x


def init_params(key, cfg):
    C = cfg["embed_dim"]
    ic, p = cfg["in_chans"], cfg["patch_size"]
    Hp = cfg["img_size"] // p
    Np = Hp * Hp
    hid = int(C * cfg["mlp_ratio"])
    pd = ic * p * p
    pd_pad = _round_up(pd, LANE)
    nc_pad = _round_up(cfg["num_classes"], LANE)
    keys = iter(jax.random.split(key, 8 + 4 * cfg["depth"]))

    def nrm(shape, std=0.02):
        return jax.random.normal(next(keys), shape, jnp.float32) * std

    # patch embed (default stem): Conv2d(ic, C, k=p, s=p) -> matmul form,
    # contraction dim zero-padded to 128 lanes. Weights stored in bf16.
    pe_w = nrm((C, ic, p, p)).reshape(C, pd).T             # (pd, C)
    pe_w = jnp.pad(pe_w, ((0, pd_pad - pd), (0, 0)))
    head_w = jnp.pad(nrm((C, cfg["num_classes"])),
                     ((0, 0), (0, nc_pad - cfg["num_classes"])))

    params = {
        "pe_w": pe_w.astype(jnp.bfloat16),
        "pe_b": jnp.zeros((1, C), jnp.float32),
        "pos": nrm((Np, C)),                               # pos_embed
        "ln_f_g": jnp.ones((1, C), jnp.float32),           # norm_before_pooling
        "ln_f_b": jnp.zeros((1, C), jnp.float32),
        "head_w": head_w.astype(jnp.bfloat16),             # (C, nc_pad)
        "head_b": jnp.zeros((1, nc_pad), jnp.float32),
        "blocks": [],
    }
    for _ in range(cfg["depth"]):
        params["blocks"].append({
            "ln1_g": jnp.ones((1, C), jnp.float32),
            "ln1_b": jnp.zeros((1, C), jnp.float32),
            "qkv_w": nrm((C, 3 * C)).astype(jnp.bfloat16),
            "qkv_b": jnp.zeros((1, 3 * C), jnp.float32),   # qkv_bias=True
            "proj_w": nrm((C, C)).astype(jnp.bfloat16),
            "proj_b": jnp.zeros((1, C), jnp.float32),
            "ln2_g": jnp.ones((1, C), jnp.float32),
            "ln2_b": jnp.zeros((1, C), jnp.float32),
            "fc1_w": nrm((C, hid)).astype(jnp.bfloat16),
            "fc1_b": jnp.zeros((1, hid), jnp.float32),
            "fc2_w": nrm((hid, C)).astype(jnp.bfloat16),
            "fc2_b": jnp.zeros((1, C), jnp.float32),
        })
    return params


def efficient_transformer_forward(params, x, cfg):
    p = cfg["patch_size"]
    pd_pad = _round_up(cfg["in_chans"] * p * p, LANE)
    # patch_embed + pos_embed (pos_drop is identity in eval)
    xp = extract_patches(x, p, p, pd_pad)                   # (B, Np, pd_pad)
    tokens = pallas_patch_embed(xp, params["pe_w"], params["pe_b"], params["pos"])
    # transformer blocks: attention kernel + MLP kernel per block
    for bp in params["blocks"]:
        tokens = pallas_attn(tokens, bp, cfg["num_heads"])
        tokens = pallas_mlp(tokens, bp)
    # norm_before_pooling -> mean over tokens -> classification head
    return pallas_head(tokens, params["ln_f_g"], params["ln_f_b"],
                       params["head_w"], params["head_b"], cfg["num_classes"])


if __name__ == "__main__":
    # Small but lane-aligned config: embed_dim=128 (lane), hd=64, hidden=512,
    # 16 tokens, patch_dim 48 -> padded to 128, num_classes 10 -> padded to 128.
    cfg = dict(img_size=16, patch_size=4, in_chans=3, embed_dim=128,
               num_heads=2, mlp_ratio=4.0, depth=2, num_classes=10)
    key = jax.random.PRNGKey(0)
    k_par, k_x = jax.random.split(key)
    params = init_params(k_par, cfg)
    x = jax.random.normal(k_x, (2, cfg["in_chans"], cfg["img_size"], cfg["img_size"]),
                          jnp.float32)                      # NCHW like PyTorch
    logits = efficient_transformer_forward(params, x, cfg)
    jax.block_until_ready(logits)
    assert logits.shape == (2, cfg["num_classes"])
    print("KERNEL_OK")
</pallas_src>

<mosaic_0001>
module attributes {stable_mosaic.version = 11 : i64} {
  func.func @patch_embed_kernel(%arg0: i32, %arg1: memref<1x16x128xf32, #tpu.memory_space<vmem>>, %arg2: memref<128x128xbf16, #tpu.memory_space<vmem>>, %arg3: memref<1x128xf32, #tpu.memory_space<vmem>>, %arg4: memref<16x128xf32, #tpu.memory_space<vmem>>, %arg5: memref<1x16x128xf32, #tpu.memory_space<vmem>>) attributes {dimension_semantics = [#tpu.dimension_semantics<parallel>], iteration_bounds = array<i64: 2>, scalar_prefetch = 0 : i64, scratch_operands = 0 : i64, tpu.core_type = #tpu.core_type<tc>, window_params = [{transform_indices = @transform_0, window_bounds = array<i64: 1, 16, 128>}, {pipeline_mode = #tpu.pipeline_mode<synchronous>, transform_indices = @transform_1, window_bounds = array<i64: 128, 128>}, {pipeline_mode = #tpu.pipeline_mode<synchronous>, transform_indices = @transform_2, window_bounds = array<i64: 1, 128>}, {pipeline_mode = #tpu.pipeline_mode<synchronous>, transform_indices = @transform_3, window_bounds = array<i64: 16, 128>}, {transform_indices = @transform_4, window_bounds = array<i64: 1, 16, 128>}]} {
    %c0 = arith.constant 0 : index
    %c0_0 = arith.constant 0 : index
    %c0_1 = arith.constant 0 : index
    %0 = vector.load %arg1[%c0, %c0_0, %c0_1] : memref<1x16x128xf32, #tpu.memory_space<vmem>>, vector<1x16x128xf32>
    %1 = vector.shape_cast %0 : vector<1x16x128xf32> to vector<16x128xf32>
    %2 = arith.truncf %1 : vector<16x128xf32> to vector<16x128xbf16>
    %c0_2 = arith.constant 0 : index
    %c0_3 = arith.constant 0 : index
    %3 = vector.load %arg2[%c0_2, %c0_3] : memref<128x128xbf16, #tpu.memory_space<vmem>>, vector<128x128xbf16>
    %cst = arith.constant dense<0.000000e+00> : vector<16x128xf32>
    %4 = tpu.matmul %2, %3, %cst {dimension_numbers = #tpu.dot_dimension_numbers<[1], [0], [0], [1], [0, 0, 1, 1], [], []>} : vector<16x128xbf16>, vector<128x128xbf16>, vector<16x128xf32> -> vector<16x128xf32>
    %c0_4 = arith.constant 0 : index
    %c0_5 = arith.constant 0 : index
    %5 = vector.load %arg3[%c0_4, %c0_5] : memref<1x128xf32, #tpu.memory_space<vmem>>, vector<1x128xf32>
    %6 = vector.broadcast %5 : vector<1x128xf32> to vector<16x128xf32>
    %7 = arith.addf %4, %6 : vector<16x128xf32>
    %c0_6 = arith.constant 0 : index
    %c0_7 = arith.constant 0 : index
    %8 = vector.load %arg4[%c0_6, %c0_7] : memref<16x128xf32, #tpu.memory_space<vmem>>, vector<16x128xf32>
    %9 = arith.addf %7, %8 : vector<16x128xf32>
    %c0_8 = arith.constant 0 : index
    %c0_9 = arith.constant 0 : index
    %c0_10 = arith.constant 0 : index
    %10 = vector.load %arg5[%c0_8, %c0_9, %c0_10] : memref<1x16x128xf32, #tpu.memory_space<vmem>>, vector<1x16x128xf32>
    %11 = vector.shape_cast %10 : vector<1x16x128xf32> to vector<16x128xf32>
    %12 = vector.shape_cast %9 : vector<16x128xf32> to vector<1x16x128xf32>
    tpu.vector_store %arg5[%c0_8, %c0_9, %c0_10], %12 {strides = array<i32>} : memref<1x16x128xf32, #tpu.memory_space<vmem>>, vector<1x16x128xf32>,
    return
  }
  func.func @transform_0(%arg0: i32) -> (i32, i32, i32) {
    %c0_i32 = arith.constant 0 : i32
    %c0_i32_0 = arith.constant 0 : i32
    %c0_i32_1 = arith.constant 0 : i32
    return %arg0, %c0_i32, %c0_i32_0 : i32, i32, i32
  }
  func.func @transform_1(%arg0: i32) -> (i32, i32) {
    %c0_i32 = arith.constant 0 : i32
    %c0_i32_0 = arith.constant 0 : i32
    %c0_i32_1 = arith.constant 0 : i32
    return %c0_i32, %c0_i32_0 : i32, i32
  }
  func.func @transform_2(%arg0: i32) -> (i32, i32) {
    %c0_i32 = arith.constant 0 : i32
    %c0_i32_0 = arith.constant 0 : i32
    %c0_i32_1 = arith.constant 0 : i32
    return %c0_i32, %c0_i32_0 : i32, i32
  }
  func.func @transform_3(%arg0: i32) -> (i32, i32) {
    %c0_i32 = arith.constant 0 : i32
    %c0_i32_0 = arith.constant 0 : i32
    %c0_i32_1 = arith.constant 0 : i32
    return %c0_i32, %c0_i32_0 : i32, i32
  }
  func.func @transform_4(%arg0: i32) -> (i32, i32, i32) {
    %c0_i32 = arith.constant 0 : i32
    %c0_i32_0 = arith.constant 0 : i32
    %c0_i32_1 = arith.constant 0 : i32
    return %arg0, %c0_i32, %c0_i32_0 : i32, i32, i32
  }
}

</mosaic_0001>

<bundles_post_ra>
// kernel: tpu_custom_call.1
= control target key start
LH: loop header
LB: loop body
LE: loop exit
PB: predicated region body
PF: predicated region fallthrough
CT: control target
= control target key end

     0   :  { %9 = vsyncpa [#allocation3], 0  ;;  %s933_s0 = inlined_call_operand.hbm [shape: f32[2,16,128], index: 0, kind: input, shape index: {}]   ;;  %s934_s1 = inlined_call_operand.hbm [shape: bf16[128,128], index: 1, kind: input, shape index: {}]   ;;  %s935_s2 = inlined_call_operand.vmem [shape: f32[1,128], index: 2, kind: input, shape index: {}]   ;;  %s936_s3 = inlined_call_operand.hbm [shape: f32[16,128], index: 3, kind: input, shape index: {}]   ;;  %s937_s4 = inlined_call_operand.hbm [shape: f32[2,16,128], index: 4, kind: output, shape index: {}]  }
   0x1   :  { %11 = vsyncpa [#allocation3 + $0x1], 0 }
   0x2   :  { %12 = vsyncpa [#allocation6], 0 }
   0x3   :  { %13 = vsyncpa [#allocation4], 0 }
   0x4   :  { %15 = vsyncpa [#allocation4 + $0x1], 0  ;;  %s779_s15 = smov 0   ;;  %s781_s16 = smov 0  }
   0x5   :  { %s783_s17 = smov 0   ;;  %s785_s18 = smov 0  }
   0x6 LB: > { %s800_s19 = sadd.s32 4294967295, %s744_s18   ;;  %s450_s20 = sadd.s32 4294967294, %s744_s18   ;;  %s744_s18 = sphi %s785_s18, %s947_s18   ;;  %s740_s17 = sphi %s783_s17, %s946_s17   ;;  %s736_s16 = sphi %s781_s16, %s945_s16   ;;  %s732_s15 = sphi %s779_s15, %s944_s15  }
   0x7   : > { %p41_p0 = scmp.ne.s32.totalorder %s736_s16, %s732_s15  ;;  %p42_p1 = scmp.eq.s32.totalorder %s800_s19, 0 }
   0x8   : > { %p128_p2 = scmp.eq.s32.totalorder %s800_s19, 1  ;;  %p134_p3 = scmp.eq.s32.totalorder %s450_s20, 1 }
   0x9   : > { %p809_p4 = por %p42_p1, %p41_p0  ;;  %p451_p5 = scmp.ge.s32.totalorder %s744_s18, 1 }
   0xa   : > { %p814_p6 = por %p134_p3, %p41_p0  ;;  %p141_p7 = scmp.lt.s32.totalorder %s744_s18, 3 }
   0xb   : > { %s152_s25 = sshll.u32 %s934_s1, 4  ;;  %s746_s27 = smov [#allocation5]   ;;  %s153_s25 = int_to_ptr.hbm [resolvable:$true] %s152_s25 }
   0xc   : > { %p822_p8 = pnand %p451_p5, %p141_p7  ;;  %s154_s28 = sshll.u32 %s746_s27, 4  ;;  %s155_s28 = int_to_ptr.vmem [resolvable:$true] %s154_s28 }
   0xd   : > { %s169_s5 = sshll.u32 %s936_s3, 4  ;;  %s747_s6 = smov 64   ;;  %s170_s5 = int_to_ptr.hbm [resolvable:$true] %s169_s5 }
   0xe   : > { %p522_p9 = pneg %p822_p8  ;;  %s748_s7 = smov 4  }
   0xf   : > { %s749_s8 = smov [#allocation7]   ;;  %s750_s10 = smov 128  }
  0x10   : > { %p523_p10 = pnand %p522_p9, %p42_p1  ;;  %s171_s9 = sshll.u32 %s749_s8, 4  ;;  %s172_s9 = int_to_ptr.vmem [resolvable:$true] %s171_s9 }
  0x11   : > { %s751_s11 = smov 8   ;;  %s838_s12 = sadd.s32 1, %s744_s18  }
  0x12   : > { %525 = dma.hbm_to_vmem [thread:$0]  (!%p523_p10), %s153_s25, 1024, %s155_s28, [#allocation6], %s747_s6, %s747_s6, %s748_s7  }
  0x13   : > { %528 = dma.hbm_to_vmem [thread:$0]  (!%p523_p10), %s170_s5, 256, %s172_s9, [#allocation6], %s750_s10, %s750_s10, %s751_s11  }
  0x14   : > { %s25_s13 = ssub.s32 %s744_s18, %s838_s12  ;;  %s28_s14 = sadd.s32 1, %s740_s17 }
  0x15   : > { %p26_p12 = scmp.eq.s32.totalorder %s25_s13, 0  ;;  %p35_p13 = scmp.ne.s32.totalorder %s740_s17, %s736_s16 }
  0x16   : > { %p36_p0 = scmp.eq.s32.totalorder %s744_s18, 0  ;;  %p539_p7 = scmp.lt.s32.totalorder %s744_s18, 2 }
  0x17   : > { %s847_s20 = scalar_select %p26_p12, %s740_s17, %s28_s14  }
  0x18   : > { %p37_p3 = por %p36_p0, %p35_p13  ;;  %p851_p5 = por %p128_p2, %p35_p13 }
  0x19   : > { %s185_s24 = sand.u32 1, %s740_s17   ;;  %s500_s27 = sshll.u32 %s744_s18, 4 }
  0x1a   : > { %s455_s25 = sshll.u32 %s185_s24, 4  ;;  %s194_s30 = scalar_lea.hbm %s933_s0, %s500_s27 }
  0x1b   : > { %s189_s5 = scalar_lea.vmem [#allocation2], %s455_s25  ;;  %s195_s7 = sshll.u32 %s194_s30, 4  ;;  %s196_s7 = int_to_ptr.hbm [resolvable:$true] %s195_s7 }
  0x1c   : > { %s197_s6 = sshll.u32 %s189_s5, 4  ;;  %p861_p9 = pnand %p539_p7, %p37_p3  ;;  %s198_s6 = int_to_ptr.vmem [resolvable:$true] %s197_s6 }
  0x1d   : > { %s186_s9 = scalar_lea.sflag [#allocation3], %s185_s24  ;;  %s644_s13 = sshra.s32 %s196_s7, 4  ;;  %s645_s13 = int_to_ptr.hbm [resolvable:$true] %s644_s13 }
  0x1e   : > { %s646_s14 = scalar_lea.hbm %s645_s13, 16  ;;  %p648_p10 = pneg %p861_p9 }
  0x1f   : > { %p647_p2 = scmp.ne.s32.totalorder %s645_s13, %s646_s14  ;;  %s651_s28 = scalar_lea.hbm %s933_s0, 32 }
  0x20   : > { %p652_p0 = scmp.lt.s32.totalorder %s645_s13, %s933_s0  ;;  %p653_p3 = scmp.lt.s32.totalorder %s651_s28, %s646_s14 }
  0x21   : > { %p649_p12 = pnand %p648_p10, %p647_p2 }
  0x22   : > { %p654_p7 = por %p653_p3, %p652_p0 }
  0x23   : > { %p650_p13 = pneg %p649_p12 }
  0x25   : > { %p655_p11 = pnand %p654_p7, %p650_p13 }
  0x27   : > { %658 = shalt.err (!%p655_p11)
}
  0x28   : > { %532 = dma.hbm_to_vmem [thread:$0]  (!%p861_p9), %s196_s7, 256, %s198_s6, %s186_s9, %s750_s10, %s750_s10, %s751_s11  }
  0x29   : > { %209 = sbr.rel (%p822_p8) target bundleno = 223 (0xdf), region = 36  ;;  %s881_s24 = sand.u32 (!%p822_p8), 1, %s736_s16  }
  0x2a   : > { %s459_s5 = sshll.u32 (!%p822_p8), %s881_s24, 4  ;;  %s212_s13 = scalar_lea.sflag (!%p822_p8), [#allocation3], %s881_s24 }
  0x2b   : > { %s215_s14 = scalar_lea.vmem (!%p822_p8), [#allocation2], %s459_s5 }
  0x2e   : > { %719 = dma.done.wait (%p809_p4), %s212_s13, 256  }
  0x2f   : > { %721 = vsyncadd (%p809_p4), %s212_s13, 4294967040 }
  0x30   : > { %723 = dma.done.wait (%p42_p1), [#allocation6], 1280  }
  0x31   : > { %725 = vsyncadd (%p42_p1), [#allocation6], 4294966016  ;;  %v508_v0 = vld [vmem:[#allocation5 + $0x38] sm:$0xff]  ;;  %v507_v1 = vld [vmem:[#allocation5 + $0x30] sm:$0xff]  ;;  %s509_s10 = sshll.u32 %s800_s19, 4  ;;  %s250_s8 = scalar_lea.vmem [#allocation8], %s459_s5 }
  0x32   : > { %322 = vmatpush.bf16.msra.mxu0 %v508_v0  ;;  %v506_v2 = vld [vmem:[#allocation5 + $0x28] sm:$0xff]  ;;  %v505_v3 = vld [vmem:[#allocation5 + $0x20] sm:$0xff]  ;;  %v504_v4 = vld [vmem:[#allocation5 + $0x18] sm:$0xff]  ;;  %s354_s7 = scalar_lea.hbm %s937_s4, %s509_s10  ;;  %s355_s9 = sshll.u32 %s250_s8, 4  ;;  %s356_s9 = int_to_ptr.vmem [resolvable:$true] %s355_s9 }
  0x33   : > { %v503_v5 = vld [vmem:[#allocation5 + $0x10] sm:$0xff]  ;;  %v502_v6 = vld [vmem:[#allocation5 + $0x8] sm:$0xff]  ;;  %v501_v7 = vld [vmem:[#allocation5] sm:$0xff]  ;;  %s357_s27 = sshll.u32 %s354_s7, 4  ;;  %s343_s25 = scalar_lea.sflag [#allocation4], %s881_s24  ;;  %s358_s27 = int_to_ptr.hbm [resolvable:$true] %s357_s27 }
  0x34   : > { %v251_v8 = vld [vmem:[%s215_s14] sm:$0xff]  ;;  %v252_v9 = vld [vmem:[%s215_s14 + $0x8] sm:$0xff]  ;;  %s688_s19 = sshra.s32 %s358_s27, 4  ;;  %s694_s5 = scalar_lea.hbm %s937_s4, 32  ;;  %s689_s19 = int_to_ptr.hbm [resolvable:$true] %s688_s19 }
  0x35   : > { %v253_v10 = vpack.c.bf16 %v252_v9, %v251_v8  ;;  %v583_v11 = vld [vmem:[%s935_s2] ss:$0 sm:$0xff]  ;;  %v337_v17 = vld [vmem:[#allocation7 + $0x8] sm:$0xff]  ;;  %s690_s28 = scalar_lea.hbm %s689_s19, 16  ;;  %p695_p11 = scmp.lt.s32.totalorder %s689_s19, %s937_s4 }
  0x36   : > { %323 = vmatpush.bf16.msra.mxu0 %v507_v1  ;;  %v336_v13 = vld [vmem:[#allocation7] sm:$0xff]  ;;  %p691_p1 = scmp.ne.s32.totalorder %s689_s19, %s690_s28  ;;  %p696_p9 = scmp.lt.s32.totalorder %s694_s5, %s690_s28 }
  0x38   : > { %p692_p4 = pnand %p691_p1, %p851_p5  ;;  %p697_p2 = por %p696_p9, %p695_p11 }
  0x3a   : > { %324 = vmatpush.bf16.msra.mxu0 %v506_v2  ;;  %p693_p8 = pneg %p692_p4 }
  0x3c   : > { %p698_p10 = pnand %p697_p2, %p693_p8 }
  0x3e   : > { %325 = vmatpush.bf16.msra.mxu0 %v505_v3 }
  0x42   : > { %326 = vmatpush.bf16.msra.mxu0 %v504_v4 }
  0x46   : > { %327 = vmatpush.bf16.msra.mxu0 %v503_v5 }
  0x4a   : > { %328 = vmatpush.bf16.msra.mxu0 %v502_v6 }
  0x4e   : > { %329 = vmatpush.bf16.msra.mxu0 %v501_v7 }
  0x51   : > { %330 = vmatmul.bf16.vlgmr.msra.gmra.mxu0 %v253_v10 }
  0xce   : > { %v331_v12 = vpop.f32.mrf.mxu0 }
  0xcf   : > { %v332_v14 = vadd.f32 %v583_v11, %v331_v12 }
  0xd1   : > { %v338_v15 = vadd.f32 %v336_v13, %v332_v14 }
  0xd3   : > { %340 = vst [vmem:[%s250_s8] sm:$0xff] %v338_v15 }
  0xd6   : > { %v333_v16 = vpop.f32.mrf.mxu0 }
  0xd7   : > { %v334_v18 = vadd.f32 %v583_v11, %v333_v16 }
  0xd9   : > { %v339_v19 = vadd.f32 %v337_v17, %v334_v18 }
  0xdb   : > { %341 = vst [vmem:[%s250_s8 + $0x8] sm:$0xff] %v339_v19 }
  0xdc   : > { %701 = shalt.err (!%p698_p10)
}
  0xdd   : > { %s752_s24 = smov 128   ;;  %s753_s21 = smov 8  }
  0xde   : > { %520 = dma.vmem_to_hbm [thread:$0]  (%p851_p5), %s356_s9, 256, %s358_s27, %s343_s25, %s752_s24, %s752_s24, %s753_s21  }
  0xdf PF: > { %s372_s26 = sand.u32 1, %s732_s15   ;;  %p943_p12 = scmp.ge.s32.totalorder %s744_s18, 2 }
  0xe0   : > { %s373_s10 = scalar_lea.sflag [#allocation4], %s372_s26 }
  0xe1   : > { %p534_p13 = pnand %p943_p12, %p814_p6 }
  0xe3   : > { %p535_p0 = pneg %p534_p13 }
  0xe5   : > { %727 = dma.done.wait (%p535_p0), %s373_s10, 256  }
  0xe6   : > { %729 = vsyncadd (%p535_p0), %s373_s10, 4294967040  ;;  %p18_p3 = scmp.ge.s32.totalorder %s838_s12, 4   ;;  %s944_s15 = smov %s736_s16 }
  0xe7   : > { %s945_s16 = smov %s740_s17  ;;  %s946_s17 = smov %s847_s20 }
  0xe8   : > { %s947_s18 = smov %s838_s12  ;;  %20 = sbr.rel (!%p18_p3) target bundleno = 6 (0x6), region = 89 }
  0xed   :  { %379 = vsyncpa [#allocation3], 1 }
  0xee   :  { %381 = vsyncpa [#allocation3 + $0x1], 1 }
  0xef   :  { %382 = vsyncpa [#allocation6], 1 }
  0xf0   :  { %383 = vsyncpa [#allocation4], 1 }
  0xf1   :  { %385 = vsyncpa [#allocation4 + $0x1], 1 }

</bundles_post_ra>
